<compile_context>
chip_gen: v7x
topology: tpu7x:2x2x1
jax: 0.10.0
libtpu: 0.0.40
codegen_flags: <defaults>
</compile_context>

<pallas_src>
import jax
import jax.numpy as jnp
from jax.experimental import pallas as pl
from jax.experimental.pallas import tpu as pltpu

IN_FEAT = 4 * 4 * 3   # 48
H1 = 128
H2 = 64
OUT = 3
TB_DEFAULT = 4096     # batch tile target (sweep 2048-8192)
_MIN_SPLIT_B = 256    # only force a 2-step grid (v7x megacore) above this B


def blob_mlp_kernel(x_ref, w1_ref, b1_ref, w2_ref, b2_ref, w3_ref, b3_ref, o_ref):
    # One batch tile per grid step; all three Linear(+ReLU) layers fused.
    # x arrives f32 from HBM; cast to bf16 here (VALU slot is idle under MXU).
    x = x_ref[...].astype(jnp.bfloat16)                                 # (TB, 48)

    # fc1: bf16 MXU matmul, f32 accumulate; bias + ReLU in f32.
    h1 = jnp.dot(x, w1_ref[...], preferred_element_type=jnp.float32)   # (TB, 128)
    h1 = jnp.maximum(h1 + b1_ref[...], 0.0)
    # dropout(0.2): identity in eval mode

    # fc2
    h2 = jnp.dot(h1.astype(jnp.bfloat16), w2_ref[...],
                 preferred_element_type=jnp.float32)                    # (TB, 64)
    h2 = jnp.maximum(h2 + b2_ref[...], 0.0)
    # dropout(0.2): identity in eval mode

    # fc3 (no activation)
    out = jnp.dot(h2.astype(jnp.bfloat16), w3_ref[...],
                  preferred_element_type=jnp.float32)                   # (TB, 3)
    o_ref[...] = (out + b3_ref[...]).astype(o_ref.dtype)


def _choose_tile(B, tb_target):
    """Pick (TB, B_pad, n_steps): TB multiple of 16, padding waste < 16 rows,
    and >=2 grid steps when B is large enough for v7x megacore sharding."""
    n = max(1, pl.cdiv(B, tb_target))
    if n == 1 and B >= _MIN_SPLIT_B:
        n = 2                                   # give each v7x TC a step
    tb = pl.cdiv(B, n)
    tb = ((tb + 15) // 16) * 16                 # multiple of 16 (bf16 sublanes)
    n_steps = pl.cdiv(B, tb)
    return tb, n_steps * tb, n_steps


def blob_forward(x_img, params, *, tb=TB_DEFAULT):
    """x_img: (B, 4, 4, 3) float32  ->  (B, 3) float32."""
    w1, b1, w2, b2, w3, b3 = params
    B = x_img.shape[0]
    x_flat = x_img.reshape(B, IN_FEAT)          # row-major flatten == torch .view(-1, 48)

    TB, B_pad, n_steps = _choose_tile(B, tb)
    if B_pad != B:
        # <16 rows of padding by construction; negligible copy.
        x_flat = jnp.pad(x_flat, ((0, B_pad - B), (0, 0)))

    # Weights in bf16 (tiny, ~30 KiB total; one-time host cast). x stays f32
    # and is cast in-kernel. Biases stay f32 for the f32 epilogue.
    w1b = w1.astype(jnp.bfloat16)
    w2b = w2.astype(jnp.bfloat16)
    w3b = w3.astype(jnp.bfloat16)

    grid = (n_steps,)

    # x / output: one batch tile per grid step (auto double-buffered pipeline).
    x_spec = pl.BlockSpec((TB, IN_FEAT), lambda i: (i, 0))
    o_spec = pl.BlockSpec((TB, OUT), lambda i: (i, 0))

    # Weights/biases: constant block index => loaded once, resident in VMEM.
    def resident(shape):
        return pl.BlockSpec(shape, lambda i: (0, 0))

    flops = 2 * B_pad * (IN_FEAT * H1 + H1 * H2 + H2 * OUT)
    bytes_accessed = (
        B_pad * IN_FEAT * 4                             # f32 input stream
        + B_pad * OUT * 4                               # f32 output stream
        + (w1b.size + w2b.size + w3b.size) * 2          # bf16 weights (once)
        + (b1.size + b2.size + b3.size) * 4             # f32 biases (once)
    )

    out = pl.pallas_call(
        blob_mlp_kernel,
        out_shape=jax.ShapeDtypeStruct((B_pad, OUT), jnp.float32),
        grid=grid,
        in_specs=[
            x_spec,
            resident((IN_FEAT, H1)), resident((1, H1)),
            resident((H1, H2)),      resident((1, H2)),
            resident((H2, OUT)),     resident((1, OUT)),
        ],
        out_specs=o_spec,
        compiler_params=pltpu.CompilerParams(
            dimension_semantics=("parallel",),
            # Explicit limit: keeps TB=4096+ safe under v5e's 16 MiB default
            # scoped-VMEM, and stays within v7x's 64 MiB physical VMEM.
            vmem_limit_bytes=64 * 1024 * 1024,
        ),
        cost_estimate=pl.CostEstimate(
            flops=flops, transcendentals=0, bytes_accessed=bytes_accessed),
    )(x_flat, w1b, b1, w2b, b2, w3b, b3)

    return out[:B]


def init_params(key):
    """Deterministic init mimicking nn.Linear's U(-1/sqrt(fan_in), 1/sqrt(fan_in))."""
    ks = jax.random.split(key, 6)

    def linear(kw, kb, fan_in, fan_out):
        bound = 1.0 / jnp.sqrt(jnp.float32(fan_in))
        w = jax.random.uniform(kw, (fan_in, fan_out), jnp.float32, -bound, bound)
        b = jax.random.uniform(kb, (1, fan_out), jnp.float32, -bound, bound)
        return w, b

    w1, b1 = linear(ks[0], ks[1], IN_FEAT, H1)
    w2, b2 = linear(ks[2], ks[3], H1, H2)
    w3, b3 = linear(ks[4], ks[5], H2, OUT)
    return w1, b1, w2, b2, w3, b3


def blob_reference(x_img, params):
    """Pure-JAX f32 reference for correctness check."""
    w1, b1, w2, b2, w3, b3 = params
    x = x_img.reshape(x_img.shape[0], IN_FEAT)
    x = jnp.maximum(x @ w1 + b1, 0.0)
    x = jnp.maximum(x @ w2 + b2, 0.0)
    return x @ w3 + b3


if __name__ == "__main__":
    key = jax.random.PRNGKey(0)
    k_param, k_x = jax.random.split(key)

    params = init_params(k_param)
    B = 8
    x = jax.random.normal(k_x, (B, 4, 4, 3), jnp.float32)

    out = blob_forward(x, params)
    out = jax.block_until_ready(out)

    ref = blob_reference(x, params)
    assert out.shape == (B, OUT)
    # bf16 weights on the MXU -> loosen tolerance vs. the f32 reference.
    assert jnp.allclose(out, ref, atol=5e-2, rtol=5e-2), (
        float(jnp.max(jnp.abs(out - ref))))

    print("KERNEL_OK")
</pallas_src>

<mosaic_0001>
module attributes {stable_mosaic.version = 11 : i64} {
  func.func @blob_mlp_kernel(%arg0: i32, %arg1: memref<16x48xf32, #tpu.memory_space<vmem>>, %arg2: memref<48x128xbf16, #tpu.memory_space<vmem>>, %arg3: memref<1x128xf32, #tpu.memory_space<vmem>>, %arg4: memref<128x64xbf16, #tpu.memory_space<vmem>>, %arg5: memref<1x64xf32, #tpu.memory_space<vmem>>, %arg6: memref<64x3xbf16, #tpu.memory_space<vmem>>, %arg7: memref<1x3xf32, #tpu.memory_space<vmem>>, %arg8: memref<16x3xf32, #tpu.memory_space<vmem>>) attributes {dimension_semantics = [#tpu.dimension_semantics<parallel>], iteration_bounds = array<i64: 1>, scalar_prefetch = 0 : i64, scratch_operands = 0 : i64, tpu.core_type = #tpu.core_type<tc>, window_params = [{transform_indices = @transform_0, window_bounds = array<i64: 16, 48>}, {pipeline_mode = #tpu.pipeline_mode<synchronous>, transform_indices = @transform_1, window_bounds = array<i64: 48, 128>}, {pipeline_mode = #tpu.pipeline_mode<synchronous>, transform_indices = @transform_2, window_bounds = array<i64: 1, 128>}, {pipeline_mode = #tpu.pipeline_mode<synchronous>, transform_indices = @transform_3, window_bounds = array<i64: 128, 64>}, {pipeline_mode = #tpu.pipeline_mode<synchronous>, transform_indices = @transform_4, window_bounds = array<i64: 1, 64>}, {pipeline_mode = #tpu.pipeline_mode<synchronous>, transform_indices = @transform_5, window_bounds = array<i64: 64, 3>}, {pipeline_mode = #tpu.pipeline_mode<synchronous>, transform_indices = @transform_6, window_bounds = array<i64: 1, 3>}, {transform_indices = @transform_7, window_bounds = array<i64: 16, 3>}]} {
    %c0 = arith.constant 0 : index
    %c0_0 = arith.constant 0 : index
    %0 = vector.load %arg1[%c0, %c0_0] : memref<16x48xf32, #tpu.memory_space<vmem>>, vector<16x48xf32>
    %1 = arith.truncf %0 : vector<16x48xf32> to vector<16x48xbf16>
    %c0_1 = arith.constant 0 : index
    %c0_2 = arith.constant 0 : index
    %2 = vector.load %arg2[%c0_1, %c0_2] : memref<48x128xbf16, #tpu.memory_space<vmem>>, vector<48x128xbf16>
    %cst = arith.constant dense<0.000000e+00> : vector<16x128xf32>
    %3 = tpu.matmul %1, %2, %cst {dimension_numbers = #tpu.dot_dimension_numbers<[1], [0], [0], [1], [0, 0, 1, 1], [], []>} : vector<16x48xbf16>, vector<48x128xbf16>, vector<16x128xf32> -> vector<16x128xf32>
    %c0_3 = arith.constant 0 : index
    %c0_4 = arith.constant 0 : index
    %4 = vector.load %arg3[%c0_3, %c0_4] : memref<1x128xf32, #tpu.memory_space<vmem>>, vector<1x128xf32>
    %5 = vector.broadcast %4 : vector<1x128xf32> to vector<16x128xf32>
    %6 = arith.addf %3, %5 : vector<16x128xf32>
    %cst_5 = arith.constant 0.000000e+00 : f32
    %7 = vector.broadcast %cst_5 : f32 to vector<16x128xf32>
    %8 = arith.maximumf %6, %7 : vector<16x128xf32>
    %9 = arith.truncf %8 : vector<16x128xf32> to vector<16x128xbf16>
    %c0_6 = arith.constant 0 : index
    %c0_7 = arith.constant 0 : index
    %10 = vector.load %arg4[%c0_6, %c0_7] : memref<128x64xbf16, #tpu.memory_space<vmem>>, vector<128x64xbf16>
    %cst_8 = arith.constant dense<0.000000e+00> : vector<16x64xf32>
    %11 = tpu.matmul %9, %10, %cst_8 {dimension_numbers = #tpu.dot_dimension_numbers<[1], [0], [0], [1], [0, 0, 1, 1], [], []>} : vector<16x128xbf16>, vector<128x64xbf16>, vector<16x64xf32> -> vector<16x64xf32>
    %c0_9 = arith.constant 0 : index
    %c0_10 = arith.constant 0 : index
    %12 = vector.load %arg5[%c0_9, %c0_10] : memref<1x64xf32, #tpu.memory_space<vmem>>, vector<1x64xf32>
    %13 = vector.broadcast %12 : vector<1x64xf32> to vector<16x64xf32>
    %14 = arith.addf %11, %13 : vector<16x64xf32>
    %cst_11 = arith.constant 0.000000e+00 : f32
    %15 = vector.broadcast %cst_11 : f32 to vector<16x64xf32>
    %16 = arith.maximumf %14, %15 : vector<16x64xf32>
    %17 = arith.truncf %16 : vector<16x64xf32> to vector<16x64xbf16>
    %c0_12 = arith.constant 0 : index
    %c0_13 = arith.constant 0 : index
    %18 = vector.load %arg6[%c0_12, %c0_13] : memref<64x3xbf16, #tpu.memory_space<vmem>>, vector<64x3xbf16>
    %cst_14 = arith.constant dense<0.000000e+00> : vector<16x3xf32>
    %19 = tpu.matmul %17, %18, %cst_14 {dimension_numbers = #tpu.dot_dimension_numbers<[1], [0], [0], [1], [0, 0, 1, 1], [], []>} : vector<16x64xbf16>, vector<64x3xbf16>, vector<16x3xf32> -> vector<16x3xf32>
    %c0_15 = arith.constant 0 : index
    %c0_16 = arith.constant 0 : index
    %20 = vector.load %arg7[%c0_15, %c0_16] : memref<1x3xf32, #tpu.memory_space<vmem>>, vector<1x3xf32>
    %21 = vector.broadcast %20 : vector<1x3xf32> to vector<16x3xf32>
    %22 = arith.addf %19, %21 : vector<16x3xf32>
    %c0_17 = arith.constant 0 : index
    %c0_18 = arith.constant 0 : index
    %23 = vector.load %arg8[%c0_17, %c0_18] : memref<16x3xf32, #tpu.memory_space<vmem>>, vector<16x3xf32>
    tpu.vector_store %arg8[%c0_17, %c0_18], %22 {strides = array<i32>} : memref<16x3xf32, #tpu.memory_space<vmem>>, vector<16x3xf32>,
    return
  }
  func.func @transform_0(%arg0: i32) -> (i32, i32) {
    %c0_i32 = arith.constant 0 : i32
    %c0_i32_0 = arith.constant 0 : i32
    return %arg0, %c0_i32 : i32, i32
  }
  func.func @transform_1(%arg0: i32) -> (i32, i32) {
    %c0_i32 = arith.constant 0 : i32
    %c0_i32_0 = arith.constant 0 : i32
    %c0_i32_1 = arith.constant 0 : i32
    return %c0_i32, %c0_i32_0 : i32, i32
  }
  func.func @transform_2(%arg0: i32) -> (i32, i32) {
    %c0_i32 = arith.constant 0 : i32
    %c0_i32_0 = arith.constant 0 : i32
    %c0_i32_1 = arith.constant 0 : i32
    return %c0_i32, %c0_i32_0 : i32, i32
  }
  func.func @transform_3(%arg0: i32) -> (i32, i32) {
    %c0_i32 = arith.constant 0 : i32
    %c0_i32_0 = arith.constant 0 : i32
    %c0_i32_1 = arith.constant 0 : i32
    return %c0_i32, %c0_i32_0 : i32, i32
  }
  func.func @transform_4(%arg0: i32) -> (i32, i32) {
    %c0_i32 = arith.constant 0 : i32
    %c0_i32_0 = arith.constant 0 : i32
    %c0_i32_1 = arith.constant 0 : i32
    return %c0_i32, %c0_i32_0 : i32, i32
  }
  func.func @transform_5(%arg0: i32) -> (i32, i32) {
    %c0_i32 = arith.constant 0 : i32
    %c0_i32_0 = arith.constant 0 : i32
    %c0_i32_1 = arith.constant 0 : i32
    return %c0_i32, %c0_i32_0 : i32, i32
  }
  func.func @transform_6(%arg0: i32) -> (i32, i32) {
    %c0_i32 = arith.constant 0 : i32
    %c0_i32_0 = arith.constant 0 : i32
    %c0_i32_1 = arith.constant 0 : i32
    return %c0_i32, %c0_i32_0 : i32, i32
  }
  func.func @transform_7(%arg0: i32) -> (i32, i32) {
    %c0_i32 = arith.constant 0 : i32
    %c0_i32_0 = arith.constant 0 : i32
    return %arg0, %c0_i32 : i32, i32
  }
}

</mosaic_0001>

<bundles_post_ra>
// kernel: tpu_custom_call.1
= control target key start
LH: loop header
LB: loop body
LE: loop exit
PB: predicated region body
PF: predicated region fallthrough
CT: control target
= control target key end

     0   :  { %12 = vsyncpa [#allocation3], 0  ;;  %s884_s0 = inlined_call_operand.hbm [shape: f32[16,48], index: 0, kind: input, shape index: {}]   ;;  %s885_s1 = inlined_call_operand.hbm [shape: bf16[48,128], index: 1, kind: input, shape index: {}]   ;;  %s886_s2 = inlined_call_operand.hbm [shape: f32[1,128], index: 2, kind: input, shape index: {}]   ;;  %s887_s3 = inlined_call_operand.hbm [shape: bf16[128,64], index: 3, kind: input, shape index: {}]   ;;  %s888_s4 = inlined_call_operand.hbm [shape: f32[1,64], index: 4, kind: input, shape index: {}]   ;;  %s889_s5 = inlined_call_operand.hbm [shape: bf16[64,3], index: 5, kind: input, shape index: {}]   ;;  %s890_s6 = inlined_call_operand.hbm [shape: f32[1,3], index: 6, kind: input, shape index: {}]   ;;  %s891_s7 = inlined_call_operand.hbm [shape: f32[16,3], index: 7, kind: output, shape index: {}]  }
   0x1   :  { %13 = vsyncpa [#allocation6], 0 }
   0x2   :  { %14 = vsyncpa [#allocation9], 0 }
   0x3   :  { %15 = vsyncpa [#allocation12], 0 }
   0x4   :  { %16 = vsyncpa [#allocation4], 0  ;;  %s716_s24 = smov [#allocation5]   ;;  %s530_s28 = scalar_lea.hbm %s885_s1, 384 }
   0x5   :  { %s34_s25 = sshll.u32 %s716_s24, 4  ;;  %p531_p0 = scmp.ne.s32.totalorder %s885_s1, %s530_s28  ;;  %s35_s25 = int_to_ptr.vmem [resolvable:$true] %s34_s25 }
   0x6   :  { %p534_p1 = scmp.lt.u32.totalorder %s530_s28, %s885_s1 }
   0x8   :  { %p536_p2 = pnand %p534_p1, %p531_p0 }
   0xa   :  { %539 = shalt.err (!%p536_p2)
}
   0xb   :  { %s540_s10 = scalar_lea.vmem %s35_s25, 384  ;;  %p545_p4 = scmp.lt.s32.totalorder %s35_s25, %s35_s25 }
   0xc   :  { %p541_p3 = scmp.ne.s32.totalorder %s35_s25, %s540_s10  ;;  %p546_p5 = scmp.lt.s32.totalorder %s540_s10, %s540_s10 }
   0xe   :  { %p547_p6 = por %p546_p5, %p545_p4 }
  0x10   :  { %p548_p7 = pnand %p547_p6, %p541_p3 }
  0x12   :  { %551 = shalt.err (!%p548_p7)
}
  0x13   :  { %s717_s11 = smov 64   ;;  %s718_s12 = smov 4  }
  0x14   :  { %40 = dma.hbm_to_vmem [thread:$0]  %s885_s1, 384, %s35_s25, [#allocation6], %s717_s11, %s717_s11, %s718_s12  }
  0x15   :  { %s719_s15 = smov [#allocation8]   ;;  %s720_s17 = smov [#allocation11]  }
  0x16   :  { %s56_s16 = sshll.u32 %s719_s15, 4  ;;  %s78_s18 = sshll.u32 %s720_s17, 4  ;;  %s57_s16 = int_to_ptr.vmem [resolvable:$true] %s56_s16  ;;  %s79_s18 = int_to_ptr.vmem [resolvable:$true] %s78_s18 }
  0x17   :  { %s552_s21 = scalar_lea.hbm %s887_s3, 1024 }
  0x18   :  { %p553_p8 = scmp.ne.s32.totalorder %s887_s3, %s552_s21  ;;  %p556_p9 = scmp.lt.u32.totalorder %s552_s21, %s887_s3 }
  0x1a   :  { %p558_p10 = pnand %p556_p9, %p553_p8 }
  0x1c   :  { %561 = shalt.err (!%p558_p10)
}
  0x1d   :  { %s562_s1 = scalar_lea.vmem %s57_s16, 1024  ;;  %p567_p12 = scmp.lt.s32.totalorder %s57_s16, %s57_s16 }
  0x1e   :  { %p563_p11 = scmp.ne.s32.totalorder %s57_s16, %s562_s1  ;;  %p568_p13 = scmp.lt.s32.totalorder %s562_s1, %s562_s1 }
  0x20   :  { %p569_p0 = por %p568_p13, %p567_p12 }
  0x22   :  { %p570_p1 = pnand %p569_p0, %p563_p11 }
  0x24   :  { %573 = shalt.err (!%p570_p1)
}
  0x25   :  { %62 = dma.hbm_to_vmem [thread:$0]  %s887_s3, 1024, %s57_s16, [#allocation9], %s717_s11, %s717_s11, %s718_s12  }
  0x26   :  { %s574_s30 = scalar_lea.hbm %s889_s5, 512 }
  0x27   :  { %p575_p2 = scmp.ne.s32.totalorder %s889_s5, %s574_s30  ;;  %p578_p3 = scmp.lt.u32.totalorder %s574_s30, %s889_s5 }
  0x29   :  { %p580_p4 = pnand %p578_p3, %p575_p2 }
  0x2b   :  { %583 = shalt.err (!%p580_p4)
}
  0x2c   :  { %s584_s14 = scalar_lea.vmem %s79_s18, 512  ;;  %p589_p6 = scmp.lt.s32.totalorder %s79_s18, %s79_s18 }
  0x2d   :  { %p585_p5 = scmp.ne.s32.totalorder %s79_s18, %s584_s14  ;;  %p590_p7 = scmp.lt.s32.totalorder %s584_s14, %s584_s14 }
  0x2f   :  { %p591_p8 = por %p590_p7, %p589_p6 }
  0x31   :  { %p592_p9 = pnand %p591_p8, %p585_p5 }
  0x33   :  { %595 = shalt.err (!%p592_p9)
}
  0x34   :  { %84 = dma.hbm_to_vmem [thread:$0]  %s889_s5, 512, %s79_s18, [#allocation12], %s717_s11, %s717_s11, %s718_s12  }
  0x35   :  { %s721_s16 = smov [#allocation2]   ;;  %s596_s21 = scalar_lea.hbm %s884_s0, 256 }
  0x36   :  { %s22_s17 = sshll.u32 %s721_s16, 4  ;;  %p597_p10 = scmp.ne.s32.totalorder %s884_s0, %s596_s21  ;;  %s23_s17 = int_to_ptr.vmem [resolvable:$true] %s22_s17 }
  0x37   :  { %p600_p11 = scmp.lt.u32.totalorder %s596_s21, %s884_s0 }
  0x39   :  { %p602_p12 = pnand %p600_p11, %p597_p10 }
  0x3b   :  { %605 = shalt.err (!%p602_p12)
}
  0x3c   :  { %s606_s1 = scalar_lea.vmem %s23_s17, 256  ;;  %p611_p0 = scmp.lt.s32.totalorder %s23_s17, %s23_s17 }
  0x3d   :  { %p607_p13 = scmp.ne.s32.totalorder %s23_s17, %s606_s1  ;;  %p612_p1 = scmp.lt.s32.totalorder %s606_s1, %s606_s1 }
  0x3f   :  { %p613_p2 = por %p612_p1, %p611_p0 }
  0x41   :  { %p614_p3 = pnand %p613_p2, %p607_p13 }
  0x43   :  { %617 = shalt.err (!%p614_p3)
}
  0x44   :  { %s722_s5 = smov 128   ;;  %s723_s11 = smov 8  }
  0x45   :  { %28 = dma.hbm_to_vmem [thread:$0]  %s884_s0, 256, %s23_s17, [#allocation3], %s722_s5, %s722_s5, %s723_s11  }
  0x46   :  { %s724_s25 = smov [#allocation7]   ;;  %s725_s28 = smov [#allocation10]  }
  0x47   :  { %s47_s27 = sshll.u32 %s724_s25, 4  ;;  %s69_s29 = sshll.u32 %s725_s28, 4  ;;  %s48_s27 = int_to_ptr.vmem [resolvable:$true] %s47_s27  ;;  %s70_s29 = int_to_ptr.vmem [resolvable:$true] %s69_s29 }
  0x48   :  { %s618_s9 = scalar_lea.hbm %s886_s2, 16 }
  0x49   :  { %p619_p4 = scmp.ne.s32.totalorder %s886_s2, %s618_s9  ;;  %p622_p5 = scmp.lt.u32.totalorder %s618_s9, %s886_s2 }
  0x4b   :  { %p624_p6 = pnand %p622_p5, %p619_p4 }
  0x4d   :  { %627 = shalt.err (!%p624_p6)
}
  0x4e   :  { %s628_s0 = scalar_lea.vmem %s48_s27, 16  ;;  %s632_s15 = scalar_lea.vmem %s48_s27, 32 }
  0x4f   :  { %p629_p7 = scmp.ne.s32.totalorder %s48_s27, %s628_s0  ;;  %p633_p8 = scmp.lt.s32.totalorder %s48_s27, %s48_s27 }
  0x50   :  { %p634_p9 = scmp.lt.s32.totalorder %s632_s15, %s628_s0 }
  0x52   :  { %p635_p10 = por %p634_p9, %p633_p8 }
  0x54   :  { %p636_p11 = pnand %p635_p10, %p629_p7 }
  0x56   :  { %639 = shalt.err (!%p636_p11)
}
  0x57   :  { %50 = dma.hbm_to_vmem [thread:$0]  %s886_s2, 16, %s48_s27, [#allocation6]  }
  0x58   :  { %s640_s21 = scalar_lea.hbm %s888_s4, 16 }
  0x59   :  { %p641_p12 = scmp.ne.s32.totalorder %s888_s4, %s640_s21  ;;  %p644_p13 = scmp.lt.u32.totalorder %s640_s21, %s888_s4 }
  0x5b   :  { %p646_p0 = pnand %p644_p13, %p641_p12 }
  0x5d   :  { %649 = shalt.err (!%p646_p0)
}
  0x5e   :  { %s650_s1 = scalar_lea.vmem %s70_s29, 16  ;;  %s654_s12 = scalar_lea.vmem %s70_s29, 32 }
  0x5f   :  { %p651_p1 = scmp.ne.s32.totalorder %s70_s29, %s650_s1  ;;  %p655_p2 = scmp.lt.s32.totalorder %s70_s29, %s70_s29 }
  0x60   :  { %p656_p3 = scmp.lt.s32.totalorder %s654_s12, %s650_s1 }
  0x62   :  { %p657_p4 = por %p656_p3, %p655_p2 }
  0x64   :  { %p658_p5 = pnand %p657_p4, %p651_p1 }
  0x66   :  { %661 = shalt.err (!%p658_p5)
}
  0x67   :  { %72 = dma.hbm_to_vmem [thread:$0]  %s888_s4, 16, %s70_s29, [#allocation9]  }
  0x68   :  { %s726_s25 = smov [#allocation13]   ;;  %s662_s8 = scalar_lea.hbm %s890_s6, 16 }
  0x69   :  { %s91_s27 = sshll.u32 %s726_s25, 4  ;;  %p663_p6 = scmp.ne.s32.totalorder %s890_s6, %s662_s8  ;;  %s92_s27 = int_to_ptr.vmem [resolvable:$true] %s91_s27 }
  0x6a   :  { %p666_p7 = scmp.lt.u32.totalorder %s662_s8, %s890_s6 }
  0x6c   :  { %p668_p8 = pnand %p666_p7, %p663_p6 }
  0x6e   :  { %671 = shalt.err (!%p668_p8)
}
  0x6f   :  { %s672_s3 = scalar_lea.vmem %s92_s27, 16  ;;  %s676_s4 = scalar_lea.vmem %s92_s27, 32 }
  0x70   :  { %p673_p9 = scmp.ne.s32.totalorder %s92_s27, %s672_s3  ;;  %p677_p10 = scmp.lt.s32.totalorder %s92_s27, %s92_s27 }
  0x71   :  { %p678_p11 = scmp.lt.s32.totalorder %s676_s4, %s672_s3 }
  0x73   :  { %p679_p12 = por %p678_p11, %p677_p10 }
  0x75   :  { %p680_p13 = pnand %p679_p12, %p673_p9 }
  0x77   :  { %683 = shalt.err (!%p680_p13)
}
  0x78   :  { %94 = dma.hbm_to_vmem [thread:$0]  %s890_s6, 16, %s92_s27, [#allocation12]  }
  0x79   :  { %706 = dma.done.wait [#allocation3], 256  }
  0x7a   :  { %707 = vsyncadd [#allocation3], 4294967040 }
  0x7b   :  { %708 = dma.done.wait [#allocation6], 400  }
  0x7c   :  { %709 = vsyncadd [#allocation6], 4294966896 }
  0x7d   :  { %710 = dma.done.wait [#allocation9], 1040  }
  0x7e   :  { %711 = vsyncadd [#allocation9], 4294966256 }
  0x7f   :  { %712 = dma.done.wait [#allocation12], 528  }
  0x80   :  { %713 = vsyncadd [#allocation12], 4294966768  ;;  %v727_v0 = vmov 0.0   ;;  %vm728_vm0 = vmmov 0   ;;  %v515_v1 = vld [vmem:[#allocation5] sm:$0xff]   ;;  %v516_v2 = vld [vmem:[#allocation5 + $0x8] sm:$0xff]  }
  0x81   :  { %459 = vmatprep.subr.bf16.mxu0 %v727_v0  ;;  %465 = vmatprep.mubr.msk.bf16.mxu0 %vm728_vm0, %v727_v0  ;;  %v517_v3 = vld [vmem:[#allocation5 + $0x10] sm:$0xff]   ;;  %v518_v5 = vld [vmem:[#allocation8] sm:$0xff]   ;;  %v519_v7 = vld [vmem:[#allocation8 + $0x8] sm:$0xff]   ;;  %vm151_vm1 = vcmask 392192   ;;  %vm353_vm2 = vcmask 523264   ;;  %vm398_vm3 = vcmask 23552  }
  0x82   :  { %469 = vmatprep.subr.bf16.mxu1 %v727_v0  ;;  %485 = vmatprep.mubr.msk.bf16.mxu1 %vm728_vm0, %v727_v0  ;;  %v117_v4 = vld [vmem:[#allocation2] sm:$0xff]  ;;  %v118_v6 = vld [vmem:[#allocation2 + $0x8] sm:$0xff]  ;;  %v523_v12 = vld [vmem:[#allocation8 + $0x28] sm:$0xff]   ;;  %s729_s6 = smov [#allocation14]  }
  0x83   :  { %460 = vmatpush3.bf16.msra.mxu0 %v515_v1  ;;  %470 = vmatpush3.bf16.msra.mxu1 %v518_v5  ;;  %v119_v8 = vpack.c.bf16 %v118_v6, %v117_v4  ;;  %v520_v9 = vld [vmem:[#allocation8 + $0x10] sm:$0xff]   ;;  %v521_v10 = vld [vmem:[#allocation8 + $0x18] sm:$0xff]   ;;  %v522_v11 = vld [vmem:[#allocation8 + $0x20] sm:$0xff]   ;;  %s406_s15 = sshll.u32 %s729_s6, 4  ;;  %s407_s15 = int_to_ptr.vmem [resolvable:$true] %s406_s15 }
  0x84   :  { %461 = vmatprep.subr.bf16.mxu0 %v727_v0  ;;  %471 = vmatprep.subr.bf16.mxu1 %v727_v0  ;;  %v524_v13 = vld [vmem:[#allocation8 + $0x30] sm:$0xff]   ;;  %v525_v14 = vld [vmem:[#allocation8 + $0x38] sm:$0xff]   ;;  %v526_v15 = vld [vmem:[#allocation11] sm:$0xff]   ;;  %s684_s16 = scalar_lea.vmem %s407_s15, 256  ;;  %p689_p1 = scmp.lt.s32.totalorder %s407_s15, %s407_s15 }
  0x85   :  { %v527_v16 = vld [vmem:[#allocation11 + $0x8] sm:$0xff]   ;;  %v421_v17 = vld [vmem:[#allocation7] ss:$0 sm:$0xff]  ;;  %v528_v27 = vld [vmem:[#allocation11 + $0x10] sm:$0xff]   ;;  %p685_p0 = scmp.ne.s32.totalorder %s407_s15, %s684_s16  ;;  %p690_p2 = scmp.lt.s32.totalorder %s684_s16, %s684_s16 }
  0x86   :  { %v529_v28 = vld [vmem:[#allocation11 + $0x18] sm:$0xff]   ;;  %v435_v39 = vld [vmem:[#allocation13] ss:$0 sm:$0xff] }
  0x87   :  { %462 = vmatpush3.bf16.msra.mxu0 %v516_v2  ;;  %472 = vmatpush3.bf16.msra.mxu1 %v519_v7  ;;  %v426_v29 = vld [vmem:[#allocation10] ss:$0 sm:$0xff]  ;;  %p691_p3 = por %p690_p2, %p689_p1 }
  0x88   :  { %463 = vmatprep.subr.bf16.mxu0 %v727_v0  ;;  %473 = vmatprep.subr.bf16.mxu1 %v727_v0 }
  0x89   :  { %p692_p4 = pnand %p691_p3, %p685_p0 }
  0x8b   :  { %464 = vmatpush3.bf16.msra.mxu0 %v517_v3  ;;  %474 = vmatpush3.bf16.msra.mxu1 %v520_v9 }
  0x8c   :  { %489 = vmatprep.subr.bf16.mxu0 %v727_v0  ;;  %475 = vmatprep.subr.bf16.mxu1 %v727_v0 }
  0x8e   :  { %466 = vmatmul.mubr.msk.bf16.vlgmr.msra.gmra.mrb[0].mxu0 %vm151_vm1, %v119_v8 }
  0x8f   :  { %497 = vmatprep.mubr.msk.bf16.mxu0 %vm728_vm0, %v727_v0  ;;  %476 = vmatpush3.bf16.msra.mxu1 %v521_v10 }
  0x90   :  { %477 = vmatprep.subr.bf16.mxu1 %v727_v0  ;;  %490 = vmatpush3.bf16.msra.mxu0 %v526_v15 }
  0x91   :  { %491 = vmatprep.subr.bf16.mxu0 %v727_v0 }
  0x93   :  { %478 = vmatpush3.bf16.msra.mxu1 %v522_v11 }
  0x94   :  { %479 = vmatprep.subr.bf16.mxu1 %v727_v0  ;;  %492 = vmatpush3.bf16.msra.mxu0 %v527_v16 }
  0x95   :  { %493 = vmatprep.subr.bf16.mxu0 %v727_v0 }
  0x97   :  { %480 = vmatpush3.bf16.msra.mxu1 %v523_v12 }
  0x98   :  { %481 = vmatprep.subr.bf16.mxu1 %v727_v0  ;;  %494 = vmatpush3.bf16.msra.mxu0 %v528_v27 }
  0x99   :  { %495 = vmatprep.subr.bf16.mxu0 %v727_v0 }
  0x9b   :  { %482 = vmatpush3.bf16.msra.mxu1 %v524_v13 }
  0x9c   :  { %483 = vmatprep.subr.bf16.mxu1 %v727_v0  ;;  %496 = vmatpush3.bf16.msra.mxu0 %v529_v28 }
  0x9f   :  { %484 = vmatpush3.bf16.msra.mxu1 %v525_v14 }
 0x161   :  { %v189_v18 = vpop.f32.mrb[0].mxu0 }
 0x162   :  { %v190_v19 = vadd.f32 %v421_v17, %v189_v18  ;;  %v467_v20 = vpop.f32.mrb[1].mxu0 }
 0x163   :  { %v192_v21 = vpop.f32.mrb[2].mxu0 }
 0x164   :  { %v193_v22 = vadd.f32 %v421_v17, %v192_v21  ;;  %v468_v23 = vpop.f32.mrb[3].mxu0  ;;  %v196_v24 = vmax.f32 %v190_v19, 0.0 }
 0x166   :  { %v197_v25 = vmax.f32 %v193_v22, 0.0 }
 0x168   :  { %v198_v26 = vpack.c.bf16 %v197_v25, %v196_v24 }
 0x16a   :  { %486 = vmatmul.mubr.bf16.vlgmr.msra.gmra.mrb[0].mxu1 %v198_v26 }
 0x23d   :  { %v304_v30 = vpop.f32.mrb[0].mxu1 }
 0x23e   :  { %v305_v31 = vadd.f32 %v426_v29, %v304_v30  ;;  %v487_v32 = vpop.f32.mrb[1].mxu1 }
 0x23f   :  { %v307_v33 = vpop.f32.mrb[2].mxu1 }
 0x240   :  { %v308_v34 = vadd.f32 %v426_v29, %v307_v33  ;;  %v488_v35 = vpop.f32.mrb[3].mxu1  ;;  %v311_v36 = vmax.f32 %v305_v31, 0.0 }
 0x242   :  { %v312_v37 = vmax.f32 %v308_v34, 0.0 }
 0x244   :  { %v313_v38 = vpack.c.bf16 %v312_v37, %v311_v36 }
 0x246   :  { %498 = vmatmul.mubr.msk.bf16.vlgmr.msra.gmra.mrb[4].mxu0 %vm353_vm2, %v313_v38 }
 0x319   :  { %v391_v40 = vpop.f32.mrb[4].mxu0 }
 0x31a   :  { %v392_v41 = vadd.f32 %v435_v39, %v391_v40  ;;  %v499_v42 = vpop.f32.mrb[5].mxu0 }
 0x31b   :  { %v394_v43 = vpop.f32.mrb[6].mxu0 }
 0x31c   :  { %v395_v44 = vadd.f32 %v435_v39, %v394_v43  ;;  %v500_v45 = vpop.f32.mrb[7].mxu0  ;;  %399 = vst.msk [vmem:[#allocation14] sm:$0xff] %vm398_vm3, %v392_v41 }
 0x31e   :  { %400 = vst.msk [vmem:[#allocation14 + $0x8] sm:$0xff] %vm398_vm3, %v395_v44 }
 0x31f   :  { %695 = shalt.err (!%p692_p4)
}
 0x320   :  { %s696_s20 = scalar_lea.hbm %s891_s7, 256 }
 0x321   :  { %p697_p5 = scmp.ne.s32.totalorder %s891_s7, %s696_s20  ;;  %p700_p6 = scmp.lt.u32.totalorder %s696_s20, %s891_s7 }
 0x323   :  { %p702_p7 = pnand %p700_p6, %p697_p5 }
 0x325   :  { %705 = shalt.err (!%p702_p7)
}
 0x326   :  { %412 = dma.vmem_to_hbm [thread:$0]  %s407_s15, 256, %s891_s7, [#allocation4], %s722_s5, %s722_s5, %s723_s11  }
 0x327   :  { %714 = dma.done.wait [#allocation4], 256  }
 0x328   :  { %715 = vsyncadd [#allocation4], 4294967040 }
 0x329   :  { %416 = vsyncpa [#allocation3], 1 }
 0x32a   :  { %417 = vsyncpa [#allocation6], 1 }
 0x32b   :  { %418 = vsyncpa [#allocation9], 1 }
 0x32c   :  { %419 = vsyncpa [#allocation12], 1 }
 0x32d   :  { %420 = vsyncpa [#allocation4], 1 }

</bundles_post_ra>
